<compile_context>
chip_gen: v7x
topology: tpu7x:2x2x1
jax: 0.10.0
libtpu: 0.0.40
codegen_flags: <defaults>
</compile_context>

<pallas_src>
import functools

import jax
import jax.numpy as jnp
from jax.experimental import pallas as pl
from jax.experimental.pallas import tpu as pltpu


def _gelu_exact(x):
    """GELU(x) = 0.5*x*(1 + erf(x/sqrt(2))), erf via Abramowitz-Stegun 7.1.26.

    Matches torch.nn.functional.gelu (approximate='none') to ~1e-7 while using
    only ops guaranteed to lower in Mosaic (exp, mul, add, where, abs).
    """
    z = x * 0.7071067811865476
    az = jnp.abs(z)
    t = 1.0 / (1.0 + 0.3275911 * az)
    poly = ((((1.061405429 * t - 1.453152027) * t + 1.421413741) * t
             - 0.284496736) * t + 0.254829592) * t
    erf_abs = 1.0 - poly * jnp.exp(-az * az)
    erf_z = jnp.where(z < 0.0, -erf_abs, erf_abs)
    return 0.5 * x * (1.0 + erf_z)


def _ffn_kernel(x_ref, w_in_ref, b_in_ref, w_dw_ref, b_dw_ref, mask_ref,
                w_out_ref, b_out_ref, o_ref, pad_ref,
                *, hw, width, hidden, pad_lanes):
    f32 = jnp.float32
    c2 = 2 * hidden
    x = x_ref[...].astype(f32)                                   # (C, HW)

    # ---- project_in: 1x1 conv == (2Hf, C) @ (C, HW) on the MXU ----
    t = jnp.dot(w_in_ref[...].astype(f32), x,
                preferred_element_type=f32) + b_in_ref[...].astype(f32)

    # ---- 3x3 depthwise conv on the flattened (2Hf, H*W) layout ----
    # Zero halos (left/right pad_lanes columns) handle the H (row) borders of
    # the flattened layout; the two precomputed column masks handle the W
    # borders (flattened row wrap-around). Only the halos are zeroed (the data
    # window is fully overwritten), and they are re-zeroed every step so the
    # kernel is correct regardless of how the grid is split across cores.
    pad_ref[:, pl.ds(0, pad_lanes)] = jnp.zeros((c2, pad_lanes), f32)
    pad_ref[:, pl.ds(pad_lanes + hw, pad_lanes)] = jnp.zeros((c2, pad_lanes), f32)
    pad_ref[:, pl.ds(pad_lanes, hw)] = t

    mask_l = mask_ref[0].astype(f32)          # (1, HW): cols valid for dj = -1
    mask_r = mask_ref[1].astype(f32)          # (1, HW): cols valid for dj = +1

    acc = jnp.zeros_like(t)
    for kb in range(3):                       # tap col: dj = kb - 1
        col_acc = None
        for ka in range(3):                   # tap row: di = ka - 1
            off = (ka - 1) * width + (kb - 1)
            shifted = pad_ref[:, pl.ds(pad_lanes + off, hw)]     # (2Hf, HW)
            term = w_dw_ref[ka * 3 + kb].astype(f32) * shifted
            col_acc = term if col_acc is None else col_acc + term
        if kb == 0:                            # mask once per column group
            col_acc = col_acc * mask_l
        elif kb == 2:
            col_acc = col_acc * mask_r
        acc = acc + col_acc
    acc = acc + b_dw_ref[...].astype(f32)

    # ---- gating: gelu(x1) * x2  (chunk(2, dim=channels)) ----
    gated = _gelu_exact(acc[:hidden]) * acc[hidden:]             # (Hf, HW)

    # ---- project_out: 1x1 conv == (C, Hf) @ (Hf, HW) on the MXU ----
    out = jnp.dot(w_out_ref[...].astype(f32), gated,
                  preferred_element_type=f32) + b_out_ref[...].astype(f32)
    o_ref[...] = out.astype(o_ref.dtype)


@jax.jit
def feedforward_nchw(x, w_in, b_in, w_dw, b_dw, w_out, b_out):
    """Forward pass of FeedForward(dim, ffn_expansion_factor, bias=True).

    x:     (B, C, H, W)      (NCHW, like the PyTorch module)
    w_in:  (2*Hf, C)     b_in:  (2*Hf,)    project_in 1x1 conv
    w_dw:  (2*Hf, 3, 3)  b_dw:  (2*Hf,)    depthwise 3x3 conv (groups = 2*Hf)
    w_out: (C, Hf)       b_out: (C,)       project_out 1x1 conv
    Pass zero biases to emulate bias=False.
    """
    b, c, h, w = x.shape
    hw = h * w
    c2 = w_in.shape[0]
    hidden = c2 // 2
    pad_lanes = ((w + 1 + 127) // 128) * 128   # lane-aligned halo for the dwconv

    # Metadata-only view: NCHW with H*W flattened onto the lane axis.
    x3 = x.reshape(b, c, hw)

    # Broadcast-friendly parameter layouts (tiny; folded by XLA under jit).
    f32 = jnp.float32
    b_in2 = b_in.reshape(c2, 1).astype(f32)
    b_dw2 = b_dw.reshape(c2, 1).astype(f32)
    b_out2 = b_out.reshape(c, 1).astype(f32)
    w_dw_taps = jnp.transpose(w_dw, (1, 2, 0)).reshape(9, c2, 1).astype(f32)

    # Column-boundary masks for the flattened depthwise conv (dj = -1 / +1).
    col = jnp.arange(hw, dtype=jnp.int32) % w
    masks = jnp.stack([col >= 1, col <= w - 2]).astype(f32).reshape(2, 1, hw)

    kernel = functools.partial(_ffn_kernel, hw=hw, width=w, hidden=hidden,
                               pad_lanes=pad_lanes)

    # Explicit VMEM budget: double-buffered in/out blocks + live f32
    # intermediates + haloed scratch, with 2x headroom, clamped well under
    # v7x's 64 MiB physical VMEM.
    f32b = 4
    step_bytes = (2 * 2 * c * hw                # in + out blocks, double-buffered
                  + 6 * c2 * hw                 # t / acc / taps / gated live values
                  + c2 * (hw + 2 * pad_lanes)   # haloed scratch
                  ) * f32b
    vmem_limit = int(min(48 * 1024 * 1024, max(8 * 1024 * 1024, 2 * step_bytes)))

    out = pl.pallas_call(
        kernel,
        out_shape=jax.ShapeDtypeStruct((b, c, hw), x.dtype),
        grid=(b,),
        in_specs=[
            pl.BlockSpec((None, c, hw), lambda i: (i, 0, 0)),    # x (batch i)
            pl.BlockSpec((c2, c), lambda i: (0, 0)),             # w_in
            pl.BlockSpec((c2, 1), lambda i: (0, 0)),             # b_in
            pl.BlockSpec((9, c2, 1), lambda i: (0, 0, 0)),       # dwconv taps
            pl.BlockSpec((c2, 1), lambda i: (0, 0)),             # b_dw
            pl.BlockSpec((2, 1, hw), lambda i: (0, 0, 0)),       # column masks
            pl.BlockSpec((c, hidden), lambda i: (0, 0)),         # w_out
            pl.BlockSpec((c, 1), lambda i: (0, 0)),              # b_out
        ],
        out_specs=pl.BlockSpec((None, c, hw), lambda i: (i, 0, 0)),
        scratch_shapes=[pltpu.VMEM((c2, hw + 2 * pad_lanes), f32)],
        compiler_params=pltpu.CompilerParams(
            dimension_semantics=("parallel",),
            vmem_limit_bytes=vmem_limit),
    )(x3, w_in, b_in2, w_dw_taps, b_dw2, masks, w_out, b_out2)
    return out.reshape(b, c, h, w)


def _reference(x, w_in, b_in, w_dw, b_dw, w_out, b_out):
    """Pure-XLA reference (conv_general_dilated), mirroring the PyTorch module."""
    dn = ("NCHW", "OIHW", "NCHW")
    hp = jax.lax.Precision.HIGHEST
    c2 = w_in.shape[0]
    hidden = c2 // 2
    xf = x.astype(jnp.float32)
    t = jax.lax.conv_general_dilated(
        xf, w_in.reshape(c2, -1, 1, 1).astype(jnp.float32), (1, 1), "VALID",
        dimension_numbers=dn, precision=hp) + b_in.reshape(1, c2, 1, 1)
    t = jax.lax.conv_general_dilated(
        t, w_dw.reshape(c2, 1, 3, 3).astype(jnp.float32), (1, 1),
        ((1, 1), (1, 1)), dimension_numbers=dn, feature_group_count=c2,
        precision=hp) + b_dw.reshape(1, c2, 1, 1)
    x1, x2 = t[:, :hidden], t[:, hidden:]
    g = jax.nn.gelu(x1, approximate=False) * x2
    out = jax.lax.conv_general_dilated(
        g, w_out.reshape(-1, hidden, 1, 1).astype(jnp.float32), (1, 1), "VALID",
        dimension_numbers=dn, precision=hp) + b_out.reshape(1, -1, 1, 1)
    return out.astype(x.dtype)


if __name__ == "__main__":
    key = jax.random.PRNGKey(0)
    B, C, H, W = 2, 4, 16, 16               # NCHW, small demo shapes
    ffn_expansion_factor = 2.0
    hidden = int(C * ffn_expansion_factor)  # 8
    c2 = 2 * hidden                         # 16
    ks = jax.random.split(key, 7)

    def bf16_exact(k, shape, scale):
        # Values exactly representable in bf16 so any MXU bf16-pass rounding of
        # the f32 matmuls stays benign in the comparison below.
        v = jax.random.normal(k, shape, jnp.float32) * scale
        return v.astype(jnp.bfloat16).astype(jnp.float32)

    x = bf16_exact(ks[0], (B, C, H, W), 1.0)
    w_in = bf16_exact(ks[1], (c2, C), C ** -0.5)
    b_in = bf16_exact(ks[2], (c2,), 0.1)
    w_dw = bf16_exact(ks[3], (c2, 3, 3), 1.0 / 3.0)
    b_dw = bf16_exact(ks[4], (c2,), 0.1)
    w_out = bf16_exact(ks[5], (C, hidden), hidden ** -0.5)
    b_out = bf16_exact(ks[6], (C,), 0.1)

    out = feedforward_nchw(x, w_in, b_in, w_dw, b_dw, w_out, b_out)
    out = jax.block_until_ready(out)
    ref = _reference(x, w_in, b_in, w_dw, b_dw, w_out, b_out)

    # Tolerance: loose enough to absorb possible MXU low-precision passes for
    # f32 matmuls on any TPU generation, but orders of magnitude below the
    # O(0.1+) error any structural mistake (wrong tap/mask/chunk) would cause.
    if bool(jnp.allclose(out, ref, atol=2e-2, rtol=2e-2)):
        print("KERNEL_OK")
    else:
        print("KERNEL_MISMATCH max_abs_err=%.3e"
              % float(jnp.max(jnp.abs(out - ref))))
</pallas_src>

<mosaic_0001>
module attributes {stable_mosaic.version = 11 : i64} {
  func.func @_ffn_kernel(%arg0: i32, %arg1: memref<1x4x256xf32, #tpu.memory_space<vmem>>, %arg2: memref<16x4xf32, #tpu.memory_space<vmem>>, %arg3: memref<16x1xf32, #tpu.memory_space<vmem>>, %arg4: memref<9x16x1xf32, #tpu.memory_space<vmem>>, %arg5: memref<16x1xf32, #tpu.memory_space<vmem>>, %arg6: memref<2x1x256xf32, #tpu.memory_space<vmem>>, %arg7: memref<4x8xf32, #tpu.memory_space<vmem>>, %arg8: memref<4x1xf32, #tpu.memory_space<vmem>>, %arg9: memref<1x4x256xf32, #tpu.memory_space<vmem>>, %arg10: memref<16x512xf32, #tpu.memory_space<vmem>>) attributes {dimension_semantics = [#tpu.dimension_semantics<parallel>], iteration_bounds = array<i64: 2>, scalar_prefetch = 0 : i64, scratch_operands = 1 : i64, tpu.core_type = #tpu.core_type<tc>, window_params = [{transform_indices = @transform_0, window_bounds = array<i64: 1, 4, 256>}, {pipeline_mode = #tpu.pipeline_mode<synchronous>, transform_indices = @transform_1, window_bounds = array<i64: 16, 4>}, {pipeline_mode = #tpu.pipeline_mode<synchronous>, transform_indices = @transform_2, window_bounds = array<i64: 16, 1>}, {pipeline_mode = #tpu.pipeline_mode<synchronous>, transform_indices = @transform_3, window_bounds = array<i64: 9, 16, 1>}, {pipeline_mode = #tpu.pipeline_mode<synchronous>, transform_indices = @transform_4, window_bounds = array<i64: 16, 1>}, {pipeline_mode = #tpu.pipeline_mode<synchronous>, transform_indices = @transform_5, window_bounds = array<i64: 2, 1, 256>}, {pipeline_mode = #tpu.pipeline_mode<synchronous>, transform_indices = @transform_6, window_bounds = array<i64: 4, 8>}, {pipeline_mode = #tpu.pipeline_mode<synchronous>, transform_indices = @transform_7, window_bounds = array<i64: 4, 1>}, {transform_indices = @transform_8, window_bounds = array<i64: 1, 4, 256>}]} {
    %c0 = arith.constant 0 : index
    %c0_0 = arith.constant 0 : index
    %c0_1 = arith.constant 0 : index
    %0 = vector.load %arg1[%c0, %c0_0, %c0_1] : memref<1x4x256xf32, #tpu.memory_space<vmem>>, vector<1x4x256xf32>
    %1 = vector.shape_cast %0 : vector<1x4x256xf32> to vector<4x256xf32>
    %c0_2 = arith.constant 0 : index
    %c0_3 = arith.constant 0 : index
    %2 = vector.load %arg2[%c0_2, %c0_3] : memref<16x4xf32, #tpu.memory_space<vmem>>, vector<16x4xf32>
    %cst = arith.constant dense<0.000000e+00> : vector<16x256xf32>
    %3 = tpu.matmul %2, %1, %cst {dimension_numbers = #tpu.dot_dimension_numbers<[1], [0], [0], [1], [0, 0, 1, 1], [], []>} : vector<16x4xf32>, vector<4x256xf32>, vector<16x256xf32> -> vector<16x256xf32>
    %c0_4 = arith.constant 0 : index
    %c0_5 = arith.constant 0 : index
    %4 = vector.load %arg3[%c0_4, %c0_5] : memref<16x1xf32, #tpu.memory_space<vmem>>, vector<16x1xf32>
    %5 = vector.broadcast %4 : vector<16x1xf32> to vector<16x256xf32>
    %6 = arith.addf %3, %5 : vector<16x256xf32>
    %cst_6 = arith.constant 0.000000e+00 : f32
    %7 = vector.broadcast %cst_6 : f32 to vector<16x128xf32>
    %c0_7 = arith.constant 0 : index
    %c0_8 = arith.constant 0 : index
    %8 = vector.load %arg10[%c0_7, %c0_8] : memref<16x512xf32, #tpu.memory_space<vmem>>, vector<16x128xf32>
    tpu.vector_store %arg10[%c0_7, %c0_8], %7 {strides = array<i32>} : memref<16x512xf32, #tpu.memory_space<vmem>>, vector<16x128xf32>,
    %cst_9 = arith.constant 0.000000e+00 : f32
    %9 = vector.broadcast %cst_9 : f32 to vector<16x128xf32>
    %c0_10 = arith.constant 0 : index
    %c384 = arith.constant 384 : index
    %10 = vector.load %arg10[%c0_10, %c384] : memref<16x512xf32, #tpu.memory_space<vmem>>, vector<16x128xf32>
    tpu.vector_store %arg10[%c0_10, %c384], %9 {strides = array<i32>} : memref<16x512xf32, #tpu.memory_space<vmem>>, vector<16x128xf32>,
    %c0_11 = arith.constant 0 : index
    %c128 = arith.constant 128 : index
    %11 = vector.load %arg10[%c0_11, %c128] : memref<16x512xf32, #tpu.memory_space<vmem>>, vector<16x256xf32>
    tpu.vector_store %arg10[%c0_11, %c128], %6 {strides = array<i32>} : memref<16x512xf32, #tpu.memory_space<vmem>>, vector<16x256xf32>,
    %c0_12 = arith.constant 0 : index
    %c0_13 = arith.constant 0 : index
    %c0_14 = arith.constant 0 : index
    %12 = vector.load %arg6[%c0_12, %c0_13, %c0_14] : memref<2x1x256xf32, #tpu.memory_space<vmem>>, vector<1x1x256xf32>
    %13 = vector.shape_cast %12 : vector<1x1x256xf32> to vector<1x256xf32>
    %c1 = arith.constant 1 : index
    %c0_15 = arith.constant 0 : index
    %c0_16 = arith.constant 0 : index
    %14 = vector.load %arg6[%c1, %c0_15, %c0_16] : memref<2x1x256xf32, #tpu.memory_space<vmem>>, vector<1x1x256xf32>
    %15 = vector.shape_cast %14 : vector<1x1x256xf32> to vector<1x256xf32>
    %cst_17 = arith.constant 0.000000e+00 : f32
    %16 = vector.broadcast %cst_17 : f32 to vector<16x256xf32>
    %c0_18 = arith.constant 0 : index
    %c111 = arith.constant 111 : index
    %17 = vector.load %arg10[%c0_18, %c111] : memref<16x512xf32, #tpu.memory_space<vmem>>, vector<16x256xf32>
    %c0_19 = arith.constant 0 : index
    %c0_20 = arith.constant 0 : index
    %c0_21 = arith.constant 0 : index
    %18 = vector.load %arg4[%c0_19, %c0_20, %c0_21] : memref<9x16x1xf32, #tpu.memory_space<vmem>>, vector<1x16x1xf32>
    %19 = vector.shape_cast %18 : vector<1x16x1xf32> to vector<16x1xf32>
    %20 = vector.broadcast %19 : vector<16x1xf32> to vector<16x256xf32>
    %21 = arith.mulf %20, %17 : vector<16x256xf32>
    %c0_22 = arith.constant 0 : index
    %c127 = arith.constant 127 : index
    %22 = vector.load %arg10[%c0_22, %c127] : memref<16x512xf32, #tpu.memory_space<vmem>>, vector<16x256xf32>
    %c3 = arith.constant 3 : index
    %c0_23 = arith.constant 0 : index
    %c0_24 = arith.constant 0 : index
    %23 = vector.load %arg4[%c3, %c0_23, %c0_24] : memref<9x16x1xf32, #tpu.memory_space<vmem>>, vector<1x16x1xf32>
    %24 = vector.shape_cast %23 : vector<1x16x1xf32> to vector<16x1xf32>
    %25 = vector.broadcast %24 : vector<16x1xf32> to vector<16x256xf32>
    %26 = arith.mulf %25, %22 : vector<16x256xf32>
    %27 = arith.addf %21, %26 : vector<16x256xf32>
    %c0_25 = arith.constant 0 : index
    %c143 = arith.constant 143 : index
    %28 = vector.load %arg10[%c0_25, %c143] : memref<16x512xf32, #tpu.memory_space<vmem>>, vector<16x256xf32>
    %c6 = arith.constant 6 : index
    %c0_26 = arith.constant 0 : index
    %c0_27 = arith.constant 0 : index
    %29 = vector.load %arg4[%c6, %c0_26, %c0_27] : memref<9x16x1xf32, #tpu.memory_space<vmem>>, vector<1x16x1xf32>
    %30 = vector.shape_cast %29 : vector<1x16x1xf32> to vector<16x1xf32>
    %31 = vector.broadcast %30 : vector<16x1xf32> to vector<16x256xf32>
    %32 = arith.mulf %31, %28 : vector<16x256xf32>
    %33 = arith.addf %27, %32 : vector<16x256xf32>
    %34 = vector.broadcast %13 : vector<1x256xf32> to vector<16x256xf32>
    %35 = arith.mulf %33, %34 : vector<16x256xf32>
    %36 = arith.addf %16, %35 : vector<16x256xf32>
    %c0_28 = arith.constant 0 : index
    %c112 = arith.constant 112 : index
    %37 = vector.load %arg10[%c0_28, %c112] : memref<16x512xf32, #tpu.memory_space<vmem>>, vector<16x256xf32>
    %c1_29 = arith.constant 1 : index
    %c0_30 = arith.constant 0 : index
    %c0_31 = arith.constant 0 : index
    %38 = vector.load %arg4[%c1_29, %c0_30, %c0_31] : memref<9x16x1xf32, #tpu.memory_space<vmem>>, vector<1x16x1xf32>
    %39 = vector.shape_cast %38 : vector<1x16x1xf32> to vector<16x1xf32>
    %40 = vector.broadcast %39 : vector<16x1xf32> to vector<16x256xf32>
    %41 = arith.mulf %40, %37 : vector<16x256xf32>
    %c0_32 = arith.constant 0 : index
    %c128_33 = arith.constant 128 : index
    %42 = vector.load %arg10[%c0_32, %c128_33] : memref<16x512xf32, #tpu.memory_space<vmem>>, vector<16x256xf32>
    %c4 = arith.constant 4 : index
    %c0_34 = arith.constant 0 : index
    %c0_35 = arith.constant 0 : index
    %43 = vector.load %arg4[%c4, %c0_34, %c0_35] : memref<9x16x1xf32, #tpu.memory_space<vmem>>, vector<1x16x1xf32>
    %44 = vector.shape_cast %43 : vector<1x16x1xf32> to vector<16x1xf32>
    %45 = vector.broadcast %44 : vector<16x1xf32> to vector<16x256xf32>
    %46 = arith.mulf %45, %42 : vector<16x256xf32>
    %47 = arith.addf %41, %46 : vector<16x256xf32>
    %c0_36 = arith.constant 0 : index
    %c144 = arith.constant 144 : index
    %48 = vector.load %arg10[%c0_36, %c144] : memref<16x512xf32, #tpu.memory_space<vmem>>, vector<16x256xf32>
    %c7 = arith.constant 7 : index
    %c0_37 = arith.constant 0 : index
    %c0_38 = arith.constant 0 : index
    %49 = vector.load %arg4[%c7, %c0_37, %c0_38] : memref<9x16x1xf32, #tpu.memory_space<vmem>>, vector<1x16x1xf32>
    %50 = vector.shape_cast %49 : vector<1x16x1xf32> to vector<16x1xf32>
    %51 = vector.broadcast %50 : vector<16x1xf32> to vector<16x256xf32>
    %52 = arith.mulf %51, %48 : vector<16x256xf32>
    %53 = arith.addf %47, %52 : vector<16x256xf32>
    %54 = arith.addf %36, %53 : vector<16x256xf32>
    %c0_39 = arith.constant 0 : index
    %c113 = arith.constant 113 : index
    %55 = vector.load %arg10[%c0_39, %c113] : memref<16x512xf32, #tpu.memory_space<vmem>>, vector<16x256xf32>
    %c2 = arith.constant 2 : index
    %c0_40 = arith.constant 0 : index
    %c0_41 = arith.constant 0 : index
    %56 = vector.load %arg4[%c2, %c0_40, %c0_41] : memref<9x16x1xf32, #tpu.memory_space<vmem>>, vector<1x16x1xf32>
    %57 = vector.shape_cast %56 : vector<1x16x1xf32> to vector<16x1xf32>
    %58 = vector.broadcast %57 : vector<16x1xf32> to vector<16x256xf32>
    %59 = arith.mulf %58, %55 : vector<16x256xf32>
    %c0_42 = arith.constant 0 : index
    %c129 = arith.constant 129 : index
    %60 = vector.load %arg10[%c0_42, %c129] : memref<16x512xf32, #tpu.memory_space<vmem>>, vector<16x256xf32>
    %c5 = arith.constant 5 : index
    %c0_43 = arith.constant 0 : index
    %c0_44 = arith.constant 0 : index
    %61 = vector.load %arg4[%c5, %c0_43, %c0_44] : memref<9x16x1xf32, #tpu.memory_space<vmem>>, vector<1x16x1xf32>
    %62 = vector.shape_cast %61 : vector<1x16x1xf32> to vector<16x1xf32>
    %63 = vector.broadcast %62 : vector<16x1xf32> to vector<16x256xf32>
    %64 = arith.mulf %63, %60 : vector<16x256xf32>
    %65 = arith.addf %59, %64 : vector<16x256xf32>
    %c0_45 = arith.constant 0 : index
    %c145 = arith.constant 145 : index
    %66 = vector.load %arg10[%c0_45, %c145] : memref<16x512xf32, #tpu.memory_space<vmem>>, vector<16x256xf32>
    %c8 = arith.constant 8 : index
    %c0_46 = arith.constant 0 : index
    %c0_47 = arith.constant 0 : index
    %67 = vector.load %arg4[%c8, %c0_46, %c0_47] : memref<9x16x1xf32, #tpu.memory_space<vmem>>, vector<1x16x1xf32>
    %68 = vector.shape_cast %67 : vector<1x16x1xf32> to vector<16x1xf32>
    %69 = vector.broadcast %68 : vector<16x1xf32> to vector<16x256xf32>
    %70 = arith.mulf %69, %66 : vector<16x256xf32>
    %71 = arith.addf %65, %70 : vector<16x256xf32>
    %72 = vector.broadcast %15 : vector<1x256xf32> to vector<16x256xf32>
    %73 = arith.mulf %71, %72 : vector<16x256xf32>
    %74 = arith.addf %54, %73 : vector<16x256xf32>
    %c0_48 = arith.constant 0 : index
    %c0_49 = arith.constant 0 : index
    %75 = vector.load %arg5[%c0_48, %c0_49] : memref<16x1xf32, #tpu.memory_space<vmem>>, vector<16x1xf32>
    %76 = vector.broadcast %75 : vector<16x1xf32> to vector<16x256xf32>
    %77 = arith.addf %74, %76 : vector<16x256xf32>
    %78 = vector.extract_strided_slice %77 {offsets = [0, 0], sizes = [8, 256], strides = [1, 1]} : vector<16x256xf32> to vector<8x256xf32>
    %cst_50 = arith.constant 0.707106769 : f32
    %79 = vector.broadcast %cst_50 : f32 to vector<8x256xf32>
    %80 = arith.mulf %78, %79 : vector<8x256xf32>
    %81 = math.absf %80 : vector<8x256xf32>
    %cst_51 = arith.constant 0.327591091 : f32
    %82 = vector.broadcast %cst_51 : f32 to vector<8x256xf32>
    %83 = arith.mulf %82, %81 : vector<8x256xf32>
    %cst_52 = arith.constant 1.000000e+00 : f32
    %84 = vector.broadcast %cst_52 : f32 to vector<8x256xf32>
    %85 = arith.addf %84, %83 : vector<8x256xf32>
    %cst_53 = arith.constant 1.000000e+00 : f32
    %86 = vector.broadcast %cst_53 : f32 to vector<8x256xf32>
    %87 = arith.divf %86, %85 : vector<8x256xf32>
    %cst_54 = arith.constant 1.06140542 : f32
    %88 = vector.broadcast %cst_54 : f32 to vector<8x256xf32>
    %89 = arith.mulf %88, %87 : vector<8x256xf32>
    %cst_55 = arith.constant 1.45315206 : f32
    %90 = vector.broadcast %cst_55 : f32 to vector<8x256xf32>
    %91 = arith.subf %89, %90 : vector<8x256xf32>
    %92 = arith.mulf %91, %87 : vector<8x256xf32>
    %cst_56 = arith.constant 1.42141378 : f32
    %93 = vector.broadcast %cst_56 : f32 to vector<8x256xf32>
    %94 = arith.addf %92, %93 : vector<8x256xf32>
    %95 = arith.mulf %94, %87 : vector<8x256xf32>
    %cst_57 = arith.constant 0.284496725 : f32
    %96 = vector.broadcast %cst_57 : f32 to vector<8x256xf32>
    %97 = arith.subf %95, %96 : vector<8x256xf32>
    %98 = arith.mulf %97, %87 : vector<8x256xf32>
    %cst_58 = arith.constant 0.254829586 : f32
    %99 = vector.broadcast %cst_58 : f32 to vector<8x256xf32>
    %100 = arith.addf %98, %99 : vector<8x256xf32>
    %101 = arith.mulf %100, %87 : vector<8x256xf32>
    %cst_59 = arith.constant 0.000000e+00 : f32
    %102 = vector.broadcast %cst_59 : f32 to vector<8x256xf32>
    %103 = arith.subf %102, %81 : vector<8x256xf32>
    %104 = arith.mulf %103, %81 : vector<8x256xf32>
    %105 = math.exp %104 : vector<8x256xf32>
    %106 = arith.mulf %101, %105 : vector<8x256xf32>
    %cst_60 = arith.constant 1.000000e+00 : f32
    %107 = vector.broadcast %cst_60 : f32 to vector<8x256xf32>
    %108 = arith.subf %107, %106 : vector<8x256xf32>
    %cst_61 = arith.constant 0.000000e+00 : f32
    %109 = vector.broadcast %cst_61 : f32 to vector<8x256xf32>
    %110 = arith.cmpf olt, %80, %109 : vector<8x256xf32>
    %cst_62 = arith.constant 0.000000e+00 : f32
    %111 = vector.broadcast %cst_62 : f32 to vector<8x256xf32>
    %112 = arith.subf %111, %108 : vector<8x256xf32>
    %113 = arith.select %110, %112, %108 : vector<8x256xi1>, vector<8x256xf32>
    %cst_63 = arith.constant 5.000000e-01 : f32
    %114 = vector.broadcast %cst_63 : f32 to vector<8x256xf32>
    %115 = arith.mulf %114, %78 : vector<8x256xf32>
    %cst_64 = arith.constant 1.000000e+00 : f32
    %116 = vector.broadcast %cst_64 : f32 to vector<8x256xf32>
    %117 = arith.addf %116, %113 : vector<8x256xf32>
    %118 = arith.mulf %115, %117 : vector<8x256xf32>
    %119 = vector.extract_strided_slice %77 {offsets = [8, 0], sizes = [8, 256], strides = [1, 1]} : vector<16x256xf32> to vector<8x256xf32>
    %120 = arith.mulf %118, %119 : vector<8x256xf32>
    %c0_65 = arith.constant 0 : index
    %c0_66 = arith.constant 0 : index
    %121 = vector.load %arg7[%c0_65, %c0_66] : memref<4x8xf32, #tpu.memory_space<vmem>>, vector<4x8xf32>
    %cst_67 = arith.constant dense<0.000000e+00> : vector<4x256xf32>
    %122 = tpu.matmul %121, %120, %cst_67 {dimension_numbers = #tpu.dot_dimension_numbers<[1], [0], [0], [1], [0, 0, 1, 1], [], []>} : vector<4x8xf32>, vector<8x256xf32>, vector<4x256xf32> -> vector<4x256xf32>
    %c0_68 = arith.constant 0 : index
    %c0_69 = arith.constant 0 : index
    %123 = vector.load %arg8[%c0_68, %c0_69] : memref<4x1xf32, #tpu.memory_space<vmem>>, vector<4x1xf32>
    %124 = vector.broadcast %123 : vector<4x1xf32> to vector<4x256xf32>
    %125 = arith.addf %122, %124 : vector<4x256xf32>
    %c0_70 = arith.constant 0 : index
    %c0_71 = arith.constant 0 : index
    %c0_72 = arith.constant 0 : index
    %126 = vector.load %arg9[%c0_70, %c0_71, %c0_72] : memref<1x4x256xf32, #tpu.memory_space<vmem>>, vector<1x4x256xf32>
    %127 = vector.shape_cast %126 : vector<1x4x256xf32> to vector<4x256xf32>
    %128 = vector.shape_cast %125 : vector<4x256xf32> to vector<1x4x256xf32>
    tpu.vector_store %arg9[%c0_70, %c0_71, %c0_72], %128 {strides = array<i32>} : memref<1x4x256xf32, #tpu.memory_space<vmem>>, vector<1x4x256xf32>,
    return
  }
  func.func @transform_0(%arg0: i32) -> (i32, i32, i32) {
    %c0_i32 = arith.constant 0 : i32
    %c0_i32_0 = arith.constant 0 : i32
    %c0_i32_1 = arith.constant 0 : i32
    return %arg0, %c0_i32, %c0_i32_0 : i32, i32, i32
  }
  func.func @transform_1(%arg0: i32) -> (i32, i32) {
    %c0_i32 = arith.constant 0 : i32
    %c0_i32_0 = arith.constant 0 : i32
    %c0_i32_1 = arith.constant 0 : i32
    return %c0_i32, %c0_i32_0 : i32, i32
  }
  func.func @transform_2(%arg0: i32) -> (i32, i32) {
    %c0_i32 = arith.constant 0 : i32
    %c0_i32_0 = arith.constant 0 : i32
    %c0_i32_1 = arith.constant 0 : i32
    return %c0_i32, %c0_i32_0 : i32, i32
  }
  func.func @transform_3(%arg0: i32) -> (i32, i32, i32) {
    %c0_i32 = arith.constant 0 : i32
    %c0_i32_0 = arith.constant 0 : i32
    %c0_i32_1 = arith.constant 0 : i32
    %c0_i32_2 = arith.constant 0 : i32
    return %c0_i32, %c0_i32_0, %c0_i32_1 : i32, i32, i32
  }
  func.func @transform_4(%arg0: i32) -> (i32, i32) {
    %c0_i32 = arith.constant 0 : i32
    %c0_i32_0 = arith.constant 0 : i32
    %c0_i32_1 = arith.constant 0 : i32
    return %c0_i32, %c0_i32_0 : i32, i32
  }
  func.func @transform_5(%arg0: i32) -> (i32, i32, i32) {
    %c0_i32 = arith.constant 0 : i32
    %c0_i32_0 = arith.constant 0 : i32
    %c0_i32_1 = arith.constant 0 : i32
    %c0_i32_2 = arith.constant 0 : i32
    return %c0_i32, %c0_i32_0, %c0_i32_1 : i32, i32, i32
  }
  func.func @transform_6(%arg0: i32) -> (i32, i32) {
    %c0_i32 = arith.constant 0 : i32
    %c0_i32_0 = arith.constant 0 : i32
    %c0_i32_1 = arith.constant 0 : i32
    return %c0_i32, %c0_i32_0 : i32, i32
  }
  func.func @transform_7(%arg0: i32) -> (i32, i32) {
    %c0_i32 = arith.constant 0 : i32
    %c0_i32_0 = arith.constant 0 : i32
    %c0_i32_1 = arith.constant 0 : i32
    return %c0_i32, %c0_i32_0 : i32, i32
  }
  func.func @transform_8(%arg0: i32) -> (i32, i32, i32) {
    %c0_i32 = arith.constant 0 : i32
    %c0_i32_0 = arith.constant 0 : i32
    %c0_i32_1 = arith.constant 0 : i32
    return %arg0, %c0_i32, %c0_i32_0 : i32, i32, i32
  }
}

</mosaic_0001>

<bundles_post_ra>
// kernel: feedforward_nchw.1
= control target key start
LH: loop header
LB: loop body
LE: loop exit
PB: predicated region body
PF: predicated region fallthrough
CT: control target
= control target key end

     0   :  { %s1318_s27 = smov 0   ;;  %s1616_s0 = inlined_call_operand.vmem [shape: f32[2,4,256], index: 0, kind: input, shape index: {}]   ;;  %s1617_s1 = inlined_call_operand.vmem [shape: f32[16,4], index: 1, kind: input, shape index: {}]   ;;  %s1618_s2 = inlined_call_operand.vmem [shape: f32[16,1], index: 2, kind: input, shape index: {}]   ;;  %s1619_s3 = inlined_call_operand.vmem [shape: f32[9,16,1], index: 3, kind: input, shape index: {}]   ;;  %s1620_s4 = inlined_call_operand.vmem [shape: f32[16,1], index: 4, kind: input, shape index: {}]   ;;  %s1621_s5 = inlined_call_operand.vmem [shape: f32[2,1,256], index: 5, kind: input, shape index: {}]   ;;  %s1622_s6 = inlined_call_operand.vmem [shape: f32[4,8], index: 6, kind: input, shape index: {}]   ;;  %s1623_s7 = inlined_call_operand.vmem [shape: f32[4,1], index: 7, kind: input, shape index: {}]   ;;  %s1624_s8 = inlined_call_operand.vmem [shape: f32[2,4,256], index: 8, kind: output, shape index: {}]  }
   0x1 LB: > { %s1183_s28 = sadd.s32 4294967295, %s1262_s27   ;;  %p1187_p0 = scmp.ge.s32.totalorder %s1262_s27, 1  ;;  %s1262_s27 = sphi %s1318_s27, %s18_s27  }
   0x2   : > { %p262_p1 = scmp.lt.s32.totalorder %s1262_s27, 3 }
   0x4   : > { %p263_p2 = pnand %p1187_p0, %p262_p1 }
   0x5   : > { %p296_p3 = scmp.lt.s32.totalorder (!%p263_p2), %s1183_s28, 1  ;;  %v1264_v0 = vmov (!%p263_p2), 0.0   ;;  %v309_v1 = vld [vmem:[%s1618_s2] sm:$0xff] (!%p263_p2)  ;;  %v1209_v2 = vld [vmem:[%s1619_s3 + $0x50] sm:$0xff] (!%p263_p2)  ;;  %v1265_v3 = vmov (!%p263_p2), 0   ;;  %vm330_vm0 = vcmask (!%p263_p2), 1043456   ;;  %v562_v20 = vlaneseq (!%p263_p2) }
   0x6   : > { %266 = sbr.rel (%p263_p2) target bundleno = 893 (0x37d), region = 52  ;;  %399 = vmatprep.mubr.f32.mxu0 (!%p263_p2), %v1264_v0  ;;  %1116 = vmatprep.mubr.f32.mxu1 (!%p263_p2), %v1264_v0  ;;  %v1203_v4 = vld [vmem:[%s1619_s3 + $0x40] sm:$0xff] (!%p263_p2)  ;;  %v1205_v5 = vld [vmem:[%s1619_s3 + $0x70] sm:$0xff] (!%p263_p2)  ;;  %vm323_vm1 = vcmask (!%p263_p2), 31744   ;;  %v310_v10 = vld [vmem:[%s1618_s2 + $0x8] sm:$0xff] (!%p263_p2)  ;;  %s1266_s26 = smov (!%p263_p2), 113  }
   0x7   : > { %1241 = vset.pattern.permute.xlu0 (!%p263_p2), %v1265_v3  ;;  %1242 = vset.pattern.permute.xlu1 (!%p263_p2), %v1265_v3  ;;  %v307_v8 = vld [vmem:[%s1617_s1] sm:$0xff] (!%p263_p2)  ;;  %v308_v11 = vld [vmem:[%s1617_s1 + $0x8] sm:$0xff] (!%p263_p2)  ;;  %v1210_v13 = vld [vmem:[%s1619_s3 + $0x58] sm:$0xff] (!%p263_p2)  ;;  %v1382_v21 = vshrl.u32 (!%p263_p2), %v562_v20, 7  ;;  %s1267_s29 = smov (!%p263_p2), 112   ;;  %s1268_s30 = smov (!%p263_p2), 96  }
   0x8   : > { %313 = vperm.xlu0 (!%p263_p2), %1241, %v309_v1   ;;  %765 = vperm.xlu1 (!%p263_p2), %1242, %v1209_v2   ;;  %v1211_v9 = vld [vmem:[%s1619_s3 + $0x80] sm:$0xff] (!%p263_p2)  ;;  %v1204_v12 = vld [vmem:[%s1619_s3 + $0x48] sm:$0xff] (!%p263_p2)  ;;  %v1206_v14 = vld [vmem:[%s1619_s3 + $0x78] sm:$0xff] (!%p263_p2)  ;;  %s1269_s22 = smov (!%p263_p2), 111   ;;  %s1270_s25 = smov (!%p263_p2), 127   ;;  %vm484_vm2 = vcmask (!%p263_p2), 916480  }
   0x9   : > { %v1212_v15 = vld [vmem:[%s1619_s3 + $0x88] sm:$0xff] (!%p263_p2)  ;;  %v1197_v16 = vld [vmem:[%s1619_s3 + $0x30] sm:$0xff] (!%p263_p2)  ;;  %v1199_v17 = vld [vmem:[%s1619_s3 + $0x60] sm:$0xff] (!%p263_p2)  ;;  %v564_v23 = vsub.s32 (!%p263_p2), 0, %v1382_v21  ;;  %v568_v45 = vsub.s32 (!%p263_p2), 1, %v1382_v21  ;;  %vm544_vm3 = vcmask (!%p263_p2), 785408  }
   0xa   : > { %v1201_v18 = vld [vmem:[%s1619_s3 + $0x10] sm:$0xff] (!%p263_p2)  ;;  %v1207_v19 = vld [vmem:[%s1619_s3 + $0x20] sm:$0xff] (!%p263_p2)  ;;  %v1198_v49 = vld [vmem:[%s1619_s3 + $0x38] sm:$0xff] (!%p263_p2)  ;;  %vm879_vm4 = vcmask (!%p263_p2), 924672   ;;  %vm574_vm5 = vcmask (!%p263_p2), 908288   ;;  %vm724_vm6 = vcmask (!%p263_p2), 1039360  }
   0xb   : > { %v1196_v22 = vld [vmem:[%s1621_s5 + $0x2] sm:$0x3] (!%p263_p2)  ;;  %v1202_v52 = vld [vmem:[%s1619_s3 + $0x18] sm:$0xff] (!%p263_p2)  ;;  %v1200_v53 = vld [vmem:[%s1619_s3 + $0x68] sm:$0xff] (!%p263_p2)  ;;  %vm908_vm7 = vcmask (!%p263_p2), 1031168   ;;  %vm1043_vm11 = vcmask (!%p263_p2), 138240  }
   0xc   : > { %615 = vperm.xlu0 (!%p263_p2), %1241, %v1203_v4   ;;  %658 = vperm.xlu1 (!%p263_p2), %1242, %v1205_v5   ;;  %v870_v24 = vrot.slane (!%p263_p2), %v1196_v22, %v564_v23  ;;  %v874_v48 = vrot.slane (!%p263_p2), %v1196_v22, %v568_v45  ;;  %v1208_v55 = vld [vmem:[%s1619_s3 + $0x28] sm:$0xff] (!%p263_p2)  ;;  %v429_v58 = vld [vmem:[%s1619_s3] sm:$0xff] (!%p263_p2)  ;;  %vm1048_vm12 = vcmask (!%p263_p2), 64512  }
   0xd   : > { %s1626_s28 = smov (!%p296_p3, %s1183_s28), 1  ;;  %v420_v1 = vld [vmem:[%s1621_s5] sm:$0x3] }
   0xe   : > { %s1222_s11 = sshll.u32 %s1626_s28, 3  ;;  %v565_v4 = vrot.slane %v420_v1, %v564_v23 }
   0xf   : > { %s300_s18 = scalar_lea.vmem %s1616_s0, %s1222_s11  ;;  %s305_s19 = scalar_lea.vmem %s1624_s8, %s1222_s11 }
  0x10   : > { %v306_v6 = vld [vmem:[%s300_s18] sm:$0xff]  ;;  %818 = vperm.xlu0 %1241, %v1211_v9   ;;  %318 = vperm.xlu1 %1242, %v310_v10  }
  0x11   : > { %v322_v7 = vcombine.high %v306_v6, %v306_v6 }
  0x13   : > { %1192 = vmatprep.subr.msk.mxu0 %vm330_vm0, %v322_v7 }
  0x14   : > { %1193 = vmatpush1.msk.msra.mxu0 %vm330_vm0, %v306_v6  ;;  %620 = vperm.xlu0 %1241, %v1204_v12  }
  0x15   : > { %1194 = vmatmul.mubr.msk.f32.vlgmr.msra.gmra.mrb[0].mxu0 %vm323_vm1, %v307_v8  ;;  %770 = vperm.xlu1 %1242, %v1210_v13  }
  0x16   : > { %405 = vmatprep.mubr.f32.mxu0 %v1264_v0 }
  0x18   : > { %663 = vperm.xlu0 %1241, %v1206_v14  }
  0x19   : > { %1195 = vmatmul.mubr.msk.f32.gmra.mrb[2].mxu0 %vm323_vm1, %v308_v11  ;;  %823 = vperm.xlu1 %1242, %v1212_v15  }
  0x1c   : > { %452 = vperm.xlu0 %1241, %v1197_v16  }
  0x1d   : > { %512 = vperm.xlu1 %1242, %v1199_v17  }
  0x20   : > { %596 = vperm.xlu0 %1241, %v1201_v18   ;;  %v569_v18 = vrot.slane %v420_v1, %v568_v45  ;;  %v430_v1 = vld [vmem:[%s1619_s3 + $0x8] sm:$0xff] }
  0x21   : > { %746 = vperm.xlu1 %1242, %v1207_v19   ;;  %v925_v19 = vld [vmem:[%s1620_s4] sm:$0xff] }
  0x25   : > { %875 = vrot.lane.b32.xlu1 %v870_v24, %s1266_s26 }
  0x87   : > { %v314_v25 = vpop.permute.xlu0 %313  ;;  %v766_v26 = vpop.permute.xlu1 %765 }
  0x88   : > { %v775_v27 = vmul.f32 0.0, %v766_v26 }
  0x8a   : > { %789 = vrot.lane.b32.xlu0 %v775_v27, %s1267_s29 }
  0x8b   : > { %v616_v28 = vpop.permute.xlu0 %615  ;;  %v659_v29 = vpop.permute.xlu1 %658 }
  0x8c   : > { %v668_v30 = vmul.f32 0.0, %v659_v29 }
  0x8e   : > { %682 = vrot.lane.b32.xlu1 %v668_v30, %s1268_s30 }
  0x8f   : > { %v819_v31 = vpop.permute.xlu0 %818  ;;  %v319_v50 = vpop.permute.xlu1 %318 }
  0x90   : > { %v828_v32 = vmul.f32 0.0, %v819_v31 }
  0x92   : > { %842 = vrot.lane.b32.xlu0 %v828_v32, %s1268_s30 }
  0x93   : > { %v621_v51 = vpop.permute.xlu0 %620 }
  0x94   : > { %v771_v54 = vpop.permute.xlu1 %770 }
  0x95   : > { %v778_v56 = vmul.f32 0.0, %v771_v54 }
  0x97   : > { %v664_v57 = vpop.permute.xlu0 %663 }
  0x98   : > { %v671_v59 = vmul.f32 0.0, %v664_v57  ;;  %v824_v60 = vpop.permute.xlu1 %823 }
  0x99   : > { %v831_v62 = vmul.f32 0.0, %v824_v60 }
  0x9b   : > { %v453_v61 = vpop.permute.xlu0 %452 }
  0x9c   : > { %v513_v0 = vpop.permute.xlu1 %512  ;;  %v460_v2 = vmul.f32 0.0, %v453_v61 }
  0x9d   : > { %v522_v5 = vmul.f32 0.0, %v513_v0 }
  0x9f   : > { %v597_v20 = vpop.permute.xlu0 %596 }
  0xa0   : > { %v747_v22 = vpop.permute.xlu1 %746  ;;  %v604_v27 = vmul.f32 0.0, %v597_v20 }
  0xa4   : > { %v1476_v24 = vpop.permute.xlu1 %875 }
  0xe8   : > { %v401_v33 = vpop.f32.mrb[0].mxu0 }
  0xe9   : > { %v1394_v34 = vadd.f32 %v401_v33, %v314_v25  ;;  %v403_v35 = vpop.f32.mrb[1].mxu0 }
  0xea   : > { %v1396_v36 = vadd.f32 %v403_v35, %v314_v25 }
  0xeb   : > { %v666_v37 = vmul.f32 %v659_v29, %v1394_v34  ;;  %v623_v38 = vmul.f32 %v616_v28, %v1394_v34  ;;  %v773_v42 = vmul.f32 %v766_v26, %v1394_v34  ;;  %v826_v44 = vmul.f32 %v819_v31, %v1394_v34 }
  0xec   : > { %v407_v39 = vpop.f32.mrb[2].mxu0  ;;  %v624_v41 = vmul.f32 %v616_v28, %v1396_v36  ;;  %v774_v43 = vmul.f32 %v766_v26, %v1396_v36  ;;  %v827_v46 = vmul.f32 %v819_v31, %v1396_v36  ;;  %v667_v47 = vmul.f32 %v659_v29, %v1396_v36 }
  0xed   : > { %v409_v40 = vpop.f32.mrb[3].mxu0  ;;  %678 = vrot.lane.b32.xlu1 %v666_v37, %s1268_s30  ;;  %631 = vrot.lane.b32.xlu0 %v623_v38, %s1267_s29  ;;  %v461_v63 = vmul.f32 %v453_v61, %v1394_v34  ;;  %v520_v3 = vmul.f32 %v513_v0, %v1394_v34  ;;  %v1447_v6 = vadd.f32 %v407_v39, %v319_v50 }
  0xee   : > { %v462_v7 = vmul.f32 %v453_v61, %v1396_v36  ;;  %v521_v8 = vmul.f32 %v513_v0, %v1396_v36  ;;  %v1453_v9 = vadd.f32 %v409_v40, %v319_v50  ;;  %v606_v39 = vmul.f32 %v597_v20, %v1396_v36 }
  0xef   : > { %v829_v10 = vmul.f32 %v824_v60, %v1447_v6  ;;  %v625_v11 = vmul.f32 %v621_v51, %v1447_v6  ;;  %v776_v13 = vmul.f32 %v771_v54, %v1447_v6  ;;  %v669_v15 = vmul.f32 %v664_v57, %v1447_v6 }
  0xf0   : > { %v626_v12 = vmul.f32 %v621_v51, %v1453_v9  ;;  %v777_v14 = vmul.f32 %v771_v54, %v1453_v9  ;;  %v670_v16 = vmul.f32 %v664_v57, %v1453_v9  ;;  %v830_v17 = vmul.f32 %v824_v60, %v1453_v9 }
  0xf1   : > { %633 = vrot.lane.b32.xlu1 %v624_v41, %s1267_s29  ;;  %785 = vrot.lane.b32.xlu0 %v773_v42, %s1267_s29  ;;  %v605_v40 = vmul.f32 %v597_v20, %v1394_v34  ;;  %v756_v41 = vmul.f32 %v747_v22, %v1396_v36  ;;  %v754_v42 = vmul.f32 0.0, %v747_v22 }
  0xf5   : > { %787 = vrot.lane.b32.xlu1 %v774_v43, %s1267_s29  ;;  %838 = vrot.lane.b32.xlu0 %v826_v44, %s1268_s30 }
  0xf9   : > { %840 = vrot.lane.b32.xlu1 %v827_v46, %s1268_s30  ;;  %680 = vrot.lane.b32.xlu0 %v667_v47, %s1268_s30  ;;  %v755_v46 = vmul.f32 %v747_v22, %v1394_v34 }
  0xfc   : > { %v790_v23 = vpop.permute.xlu0 %789 }
  0xfd   : > { %457 = vperm.xlu1 %1242, %v1198_v49   ;;  %877 = vrot.lane.b32.xlu0 %v874_v48, %s1266_s26  ;;  %s1271_s26 = smov 126  }
 0x100   : > { %v683_v26 = vpop.permute.xlu1 %682 }
 0x101   : > { %601 = vperm.xlu1 %1242, %v1202_v52   ;;  %517 = vperm.xlu0 %1241, %v1200_v53  }
 0x104   : > { %v843_v25 = vpop.permute.xlu0 %842 }
 0x105   : > { %795 = vrot.lane.b32.xlu1 %v778_v56, %s1267_s29  ;;  %751 = vperm.xlu0 %1241, %v1208_v55  }
 0x109   : > { %688 = vrot.lane.b32.xlu1 %v671_v59, %s1268_s30  ;;  %433 = vperm.xlu0 %1241, %v429_v58  }
 0x10d   : > { %848 = vrot.lane.b32.xlu0 %v831_v62, %s1268_s30  ;;  %474 = vrot.lane.b32.xlu1 %v461_v63, %s1267_s29 }
 0x111   : > { %532 = vrot.lane.b32.xlu0 %v520_v3, %s1268_s30  ;;  %472 = vrot.lane.b32.xlu1 %v460_v2, %s1267_s29 }
 0x115   : > { %536 = vrot.lane.b32.xlu0 %v522_v5, %s1268_s30  ;;  %570 = vrot.lane.b32.xlu1 %v565_v4, %s1269_s22 }
 0x119   : > { %476 = vrot.lane.b32.xlu0 %v462_v7, %s1267_s29  ;;  %534 = vrot.lane.b32.xlu1 %v521_v8, %s1268_s30 }
 0x11d   : > { %844 = vrot.lane.b32.xlu0 %v829_v10, %s1268_s30  ;;  %635 = vrot.lane.b32.xlu1 %v625_v11, %s1267_s29 }
 0x121   : > { %637 = vrot.lane.b32.xlu0 %v626_v12, %s1267_s29  ;;  %791 = vrot.lane.b32.xlu1 %v776_v13, %s1267_s29 }
 0x125   : > { %793 = vrot.lane.b32.xlu0 %v777_v14, %s1267_s29  ;;  %684 = vrot.lane.b32.xlu1 %v669_v15, %s1268_s30 }
 0x129   : > { %686 = vrot.lane.b32.xlu0 %v670_v16, %s1268_s30  ;;  %846 = vrot.lane.b32.xlu1 %v830_v17, %s1268_s30 }
 0x12d   : > { %929 = vperm.xlu1 %1242, %v925_v19   ;;  %572 = vrot.lane.b32.xlu0 %v569_v18, %s1269_s22  ;;  %v926_v18 = vld [vmem:[%s1620_s4 + $0x8] sm:$0xff] }
 0x15f   : > { %v679_v28 = vpop.permute.xlu1 %678  ;;  %v632_v29 = vpop.permute.xlu0 %631 }
 0x160   : > { %v647_v30 = vadd.f32 %v632_v29, %v604_v27 }
 0x162   : > { %v700_v31 = vadd.f32 %v679_v28, %v647_v30 }
 0x163   : > { %v634_v21 = vpop.permute.xlu1 %633  ;;  %v786_v32 = vpop.permute.xlu0 %785 }
 0x164   : > { %712 = vrot.lane.b32.xlu0 %v700_v31, %s1270_s25  ;;  %v639_v37 = vsel %vm484_vm2, %v632_v29, %v634_v21  ;;  %v649_v45 = vadd.f32 %v634_v21, %v606_v39  ;;  %v807_v58 = vadd.f32 %v786_v32, %v754_v42 }
 0x165   : > { %v648_v44 = vadd.f32 %v639_v37, %v605_v40 }
 0x167   : > { %v788_v33 = vpop.permute.xlu1 %787  ;;  %v839_v35 = vpop.permute.xlu0 %838 }
 0x168   : > { %v798_v38 = vsel %vm484_vm2, %v788_v33, %v790_v23  ;;  %v797_v43 = vsel %vm484_vm2, %v786_v32, %v788_v33  ;;  %v860_v63 = vadd.f32 %v839_v35, %v807_v58 }
 0x169   : > { %v809_v47 = vadd.f32 %v798_v38, %v756_v41  ;;  %v808_v54 = vadd.f32 %v797_v43, %v755_v46 }
 0x16a   : > { %v884_v2 = vmul.f32 %v1476_v24, %v860_v63 }
 0x16b   : > { %v841_v48 = vpop.permute.xlu1 %840  ;;  %v681_v49 = vpop.permute.xlu0 %680 }
 0x16c   : > { %v850_v50 = vsel %vm544_vm3, %v839_v35, %v841_v48  ;;  %v851_v51 = vsel %vm544_vm3, %v841_v48, %v843_v25  ;;  %v690_v52 = vsel %vm544_vm3, %v679_v28, %v681_v49  ;;  %v691_v53 = vsel %vm544_vm3, %v681_v49, %v683_v26 }
 0x16d   : > { %v862_v55 = vadd.f32 %v851_v51, %v809_v47  ;;  %v701_v56 = vadd.f32 %v690_v52, %v648_v44  ;;  %v702_v57 = vadd.f32 %v691_v53, %v649_v45  ;;  %v861_v59 = vadd.f32 %v850_v50, %v808_v54 }
 0x16f   : > { %v1490_v60 = vpop.permute.xlu0 %877  ;;  %714 = vrot.lane.b32.xlu0 %v701_v56, %s1270_s25  ;;  %716 = vrot.lane.b32.xlu1 %v702_v57, %s1270_s25 }
 0x170   : > { %v1497_v61 = vsel %vm879_vm4, %v1476_v24, %v1490_v60  ;;  %v886_v62 = vmul.f32 %v1490_v60, %v862_v55 }
 0x171   : > { %v885_v0 = vmul.f32 %v1497_v61, %v861_v59 }
 0x173   : > { %900 = vrot.lane.b32.xlu0 %v886_v62, %s1271_s26  ;;  %898 = vrot.lane.b32.xlu1 %v885_v0, %s1271_s26 }
 0x177   : > { %438 = vperm.xlu0 %1241, %v430_v1   ;;  %896 = vrot.lane.b32.xlu1 %v884_v2, %s1271_s26 }
 0x17c   : > { %v458_v3 = vpop.permute.xlu1 %457 }
 0x17d   : > { %v464_v4 = vmul.f32 %v458_v3, %v1447_v6  ;;  %v465_v5 = vmul.f32 %v458_v3, %v1453_v9  ;;  %v463_v10 = vmul.f32 0.0, %v458_v3 }
 0x17f   : > { %482 = vrot.lane.b32.xlu0 %v465_v5, %s1267_s29  ;;  %480 = vrot.lane.b32.xlu1 %v464_v4, %s1267_s29 }
 0x180   : > { %v602_v7 = vpop.permute.xlu1 %601  ;;  %v518_v8 = vpop.permute.xlu0 %517 }
 0x181   : > { %v523_v11 = vmul.f32 %v518_v8, %v1447_v6  ;;  %v524_v14 = vmul.f32 %v518_v8, %v1453_v9  ;;  %v525_v15 = vmul.f32 0.0, %v518_v8  ;;  %v607_v47 = vmul.f32 0.0, %v602_v7 }
 0x182   : > { %v608_v54 = vmul.f32 %v602_v7, %v1447_v6 }
 0x183   : > { %538 = vrot.lane.b32.xlu0 %v523_v11, %s1268_s30  ;;  %478 = vrot.lane.b32.xlu1 %v463_v10, %s1267_s29  ;;  %s1272_s29 = smov 17  }
 0x184   : > { %v796_v12 = vpop.permute.xlu1 %795  ;;  %v752_v13 = vpop.permute.xlu0 %751 }
 0x185   : > { %v757_v55 = vmul.f32 0.0, %v752_v13  ;;  %v758_v56 = vmul.f32 %v752_v13, %v1447_v6  ;;  %v759_v57 = vmul.f32 %v752_v13, %v1453_v9 }
 0x187   : > { %542 = vrot.lane.b32.xlu0 %v525_v15, %s1268_s30  ;;  %540 = vrot.lane.b32.xlu1 %v524_v14, %s1268_s30 }
 0x188   : > { %v689_v16 = vpop.permute.xlu1 %688  ;;  %v434_v17 = vpop.permute.xlu0 %433 }
 0x189   : > { %v441_v22 = vmul.f32 0.0, %v434_v17  ;;  %v443_v31 = vmul.f32 %v434_v17, %v1396_v36  ;;  %v442_v21 = vmul.f32 %v434_v17, %v1394_v34  ;;  %v609_v34 = vmul.f32 %v602_v7, %v1453_v9 }
 0x18b   : > { %934 = vperm.xlu1 %1242, %v926_v18  }
 0x18c   : > { %v849_v19 = vpop.permute.xlu0 %848  ;;  %v475_v20 = vpop.permute.xlu1 %474 }
 0x190   : > { %v533_v23 = vpop.permute.xlu0 %532  ;;  %v473_v25 = vpop.permute.xlu1 %472 }
 0x191   : > { %v485_v26 = vsel %vm484_vm2, %v473_v25, %v475_v20 }
 0x192   : > { %v495_v27 = vadd.f32 %v485_v26, %v441_v22 }
 0x194   : > { %v1522_v28 = vadd.f32 %v533_v23, %v495_v27  ;;  %v537_v29 = vpop.permute.xlu0 %536  ;;  %v1524_v30 = vpop.permute.xlu1 %570 }
 0x198   : > { %v477_v32 = vpop.permute.xlu0 %476  ;;  %v535_v33 = vpop.permute.xlu1 %534 }
 0x199   : > { %v486_v35 = vsel %vm484_vm2, %v475_v20, %v477_v32  ;;  %v497_v37 = vadd.f32 %v477_v32, %v443_v31  ;;  %v545_v38 = vsel %vm544_vm3, %v533_v23, %v535_v33  ;;  %v546_v39 = vsel %vm544_vm3, %v535_v33, %v537_v29 }
 0x19a   : > { %v496_v40 = vadd.f32 %v486_v35, %v442_v21  ;;  %v579_v33 = vmul.f32 %v1524_v30, %v1522_v28 }
 0x19b   : > { %v557_v41 = vadd.f32 %v546_v39, %v497_v37 }
 0x19c   : > { %v556_v42 = vadd.f32 %v545_v38, %v496_v40  ;;  %v845_v43 = vpop.permute.xlu0 %844  ;;  %v636_v44 = vpop.permute.xlu1 %635 }
 0x19d   : > { %v650_v36 = vadd.f32 %v636_v44, %v607_v47 }
 0x1a0   : > { %v638_v45 = vpop.permute.xlu0 %637  ;;  %v792_v46 = vpop.permute.xlu1 %791 }
 0x1a1   : > { %v640_v50 = vsel %vm484_vm2, %v636_v44, %v638_v45  ;;  %v652_v58 = vadd.f32 %v638_v45, %v609_v34  ;;  %v810_v62 = vadd.f32 %v792_v46, %v757_v55 }
 0x1a2   : > { %v651_v59 = vadd.f32 %v640_v50, %v608_v54 }
 0x1a3   : > { %v863_v13 = vadd.f32 %v845_v43, %v810_v62 }
 0x1a4   : > { %v794_v48 = vpop.permute.xlu0 %793  ;;  %v685_v49 = vpop.permute.xlu1 %684 }
 0x1a5   : > { %v799_v51 = vsel %vm484_vm2, %v792_v46, %v794_v48  ;;  %v800_v52 = vsel %vm484_vm2, %v794_v48, %v796_v12  ;;  %v703_v53 = vadd.f32 %v685_v49, %v650_v36 }
 0x1a6   : > { %v811_v63 = vadd.f32 %v799_v51, %v758_v56  ;;  %v812_v0 = vadd.f32 %v800_v52, %v759_v57 }
 0x1a7   : > { %718 = vrot.lane.b32.xlu0 %v703_v53, %s1270_s25 }
 0x1a8   : > { %v687_v1 = vpop.permute.xlu0 %686  ;;  %v847_v2 = vpop.permute.xlu1 %846 }
 0x1a9   : > { %v692_v3 = vsel %vm544_vm3, %v685_v49, %v687_v1  ;;  %v693_v4 = vsel %vm544_vm3, %v687_v1, %v689_v16  ;;  %v852_v5 = vsel %vm544_vm3, %v845_v43, %v847_v2  ;;  %v853_v7 = vsel %vm544_vm3, %v847_v2, %v849_v19 }
 0x1aa   : > { %v704_v8 = vadd.f32 %v692_v3, %v651_v59  ;;  %v705_v10 = vadd.f32 %v693_v4, %v652_v58  ;;  %v864_v11 = vadd.f32 %v852_v5, %v811_v63  ;;  %v865_v12 = vadd.f32 %v853_v7, %v812_v0 }
 0x1ab   : > { %v887_v16 = vmul.f32 %v1476_v24, %v863_v13 }
 0x1ac   : > { %722 = vrot.lane.b32.xlu1 %v705_v10, %s1270_s25  ;;  %720 = vrot.lane.b32.xlu0 %v704_v8, %s1270_s25  ;;  %v889_v14 = vmul.f32 %v1490_v60, %v865_v12  ;;  %v888_v15 = vmul.f32 %v1497_v61, %v864_v11  ;;  %v1551_v17 = vpop.permute.xlu0 %572  ;;  %v930_v18 = vpop.permute.xlu1 %929 }
 0x1ad   : > { %v1555_v20 = vsel %vm574_vm5, %v1524_v30, %v1551_v17  ;;  %v581_v22 = vmul.f32 %v1551_v17, %v557_v41 }
 0x1ae   : > { %v580_v24 = vmul.f32 %v1555_v20, %v556_v42 }
 0x1b0   : > { %906 = vrot.lane.b32.xlu0 %v889_v14, %s1271_s26  ;;  %904 = vrot.lane.b32.xlu1 %v888_v15, %s1271_s26 }
 0x1b4   : > { %902 = vrot.lane.b32.xlu1 %v887_v16, %s1271_s26 }
 0x1d6   : > { %v713_v19 = vpop.permute.xlu0 %712 }
 0x1e1   : > { %v715_v60 = vpop.permute.xlu0 %714  ;;  %v717_v61 = vpop.permute.xlu1 %716 }
 0x1e2   : > { %v726_v23 = vsel %vm724_vm6, %v715_v60, %v717_v61  ;;  %v737_v25 = vadd.f32 %v717_v61, %v581_v22  ;;  %v725_v31 = vsel %vm724_vm6, %v713_v19, %v715_v60 }
 0x1e3   : > { %v736_v26 = vadd.f32 %v726_v23, %v580_v24  ;;  %v735_v38 = vadd.f32 %v725_v31, %v579_v33 }
 0x1e5   : > { %v901_v27 = vpop.permute.xlu0 %900  ;;  %v899_v29 = vpop.permute.xlu1 %898 }
 0x1e6   : > { %v921_v21 = vadd.f32 %v901_v27, %v737_v25  ;;  %v910_v32 = vsel %vm908_vm7, %v899_v29, %v901_v27 }
 0x1e7   : > { %v920_v35 = vadd.f32 %v910_v32, %v736_v26 }
 0x1e8   : > { %v1564_v37 = vadd.f32 %v930_v18, %v921_v21 }
 0x1e9   : > { %v1566_v39 = vadd.f32 %v930_v18, %v920_v35  ;;  %v897_v40 = vpop.permute.xlu1 %896 }
 0x1ea   : > { %v1569_v41 = vmul.f32 0.70710677, %v1564_v37  ;;  %v909_v42 = vsel %vm908_vm7, %v897_v40, %v899_v29 }
 0x1eb   : > { %v1573_v43 = vmul.f32 0.70710677, %v1566_v39  ;;  %v919_v44 = vadd.f32 %v909_v42, %v735_v38 }
 0x1ec   : > { %v948_v45 = vand.u32 2147483647, %v1569_v41  ;;  %vm1008_vm8 = vcmp.lt.f32.partialorder %v1569_v41, 0.0  ;;  %v1017_v41 = vmul.f32 0.5, %v1564_v37 }
 0x1ed   : > { %v947_v28 = vand.u32 2147483647, %v1573_v43  ;;  %v1577_v46 = vadd.f32 %v930_v18, %v919_v44  ;;  %vm1007_vm9 = vcmp.lt.f32.partialorder %v1573_v43, 0.0 }
 0x1ee   : > { %v951_v47 = vmul.f32 0.3275911, %v948_v45  ;;  %v990_v53 = vsub.f32 0.0, %v948_v45 }
 0x1ef   : > { %v950_v36 = vmul.f32 0.3275911, %v947_v28  ;;  %v1580_v34 = vmul.f32 0.70710677, %v1577_v46  ;;  %v989_v55 = vsub.f32 0.0, %v947_v28 }
 0x1f0   : > { %v954_v48 = vadd.f32 1.0, %v951_v47  ;;  %v993_v59 = vmul.f32 %v990_v53, %v948_v45 }
 0x1f1   : > { %v953_v49 = vadd.f32 1.0, %v950_v36  ;;  %v946_v50 = vand.u32 2147483647, %v1580_v34  ;;  %v992_v63 = vmul.f32 %v989_v55, %v947_v28  ;;  %v481_v25 = vpop.permute.xlu1 %480  ;;  %vm1006_vm10 = vcmp.lt.f32.partialorder %v1580_v34, 0.0 }
 0x1f2   : > { %1244 = vrcp.f32 %v954_v48  ;;  %v998_v7 = vmul.f32 1.442695, %v993_v59 }
 0x1f3   : > { %1246 = vrcp.f32 %v953_v49  ;;  %v949_v51 = vmul.f32 0.3275911, %v946_v50  ;;  %v988_v0 = vsub.f32 0.0, %v946_v50  ;;  %v996_v11 = vmul.f32 1.442695, %v992_v63 }
 0x1f5   : > { %v952_v52 = vadd.f32 1.0, %v949_v51  ;;  %v991_v12 = vmul.f32 %v988_v0, %v946_v50  ;;  %v479_v40 = vpop.permute.xlu1 %478 }
 0x1f6   : > { %v439_v8 = vpop.permute.xlu0 %438 }
 0x1f7   : > { %1248 = vrcp.f32 %v952_v52  ;;  %v994_v60 = vmul.f32 1.442695, %v991_v12  ;;  %v446_v52 = vmul.f32 %v439_v8, %v1453_v9  ;;  %v444_v63 = vmul.f32 0.0, %v439_v8 }
 0x1f8   : > { %1250 = vpow2.f32 %v998_v7  ;;  %v487_v7 = vsel %vm484_vm2, %v479_v40, %v481_v25 }
 0x1f9   : > { %1252 = vpow2.f32 %v996_v11  ;;  %v541_v50 = vpop.permute.xlu1 %540 }
 0x1fa   : > { %v483_v23 = vpop.permute.xlu0 %482  ;;  %1254 = vpow2.f32 %v994_v60 }
 0x1fb   : > { %v488_v53 = vsel %vm484_vm2, %v481_v25, %v483_v23 }
 0x1fc   : > { %v1245_v54 = vpop.eup %1244 }
 0x1fd   : > { %v1247_v56 = vpop.eup %1246  ;;  %v963_v57 = vmul.f32 1.0614054, %v1245_v54 }
 0x1fe   : > { %v962_v58 = vmul.f32 1.0614054, %v1247_v56  ;;  %v539_v35 = vpop.permute.xlu0 %538 }
 0x1ff   : > { %v1215_v62 = vadd.f32 -1.4531521, %v963_v57  ;;  %v445_v57 = vmul.f32 %v439_v8, %v1447_v6  ;;  %v547_v59 = vsel %vm544_vm3, %v539_v35, %v541_v50  ;;  %v498_v6 = vadd.f32 %v487_v7, %v444_v63 }
 0x200   : > { %v1214_v1 = vadd.f32 -1.4531521, %v962_v58  ;;  %v500_v58 = vadd.f32 %v483_v23, %v446_v52 }
 0x201   : > { %v1249_v2 = vpop.eup %1248  ;;  %v969_v3 = vmul.f32 %v1245_v54, %v1215_v62  ;;  %v499_v0 = vadd.f32 %v488_v53, %v445_v57 }
 0x202   : > { %v968_v4 = vmul.f32 %v1247_v56, %v1214_v1  ;;  %v961_v5 = vmul.f32 1.0614054, %v1249_v2  ;;  %v1251_v44 = vpop.eup %1250  ;;  %v543_v48 = vpop.permute.xlu0 %542 }
 0x203   : > { %v972_v10 = vadd.f32 1.4214138, %v969_v3  ;;  %v1253_v45 = vpop.eup %1252  ;;  %v559_v9 = vadd.f32 %v547_v59, %v499_v0 }
 0x204   : > { %v971_v13 = vadd.f32 1.4214138, %v968_v4  ;;  %v1213_v14 = vadd.f32 -1.4531521, %v961_v5  ;;  %v1255_v49 = vpop.eup %1254 }
 0x205   : > { %v975_v15 = vmul.f32 %v1245_v54, %v972_v10 }
 0x206   : > { %v974_v16 = vmul.f32 %v1247_v56, %v971_v13  ;;  %v967_v18 = vmul.f32 %v1249_v2, %v1213_v14 }
 0x207   : > { %v1218_v19 = vadd.f32 -0.28449672, %v975_v15 }
 0x208   : > { %v1217_v61 = vadd.f32 -0.28449672, %v974_v16  ;;  %v970_v22 = vadd.f32 1.4214138, %v967_v18  ;;  %v558_v16 = vadd.f32 %v539_v35, %v498_v6  ;;  %v583_v18 = vmul.f32 %v1555_v20, %v559_v9 }
 0x209   : > { %v981_v24 = vmul.f32 %v1245_v54, %v1218_v19 }
 0x20a   : > { %v980_v26 = vmul.f32 %v1247_v56, %v1217_v61  ;;  %v973_v27 = vmul.f32 %v1249_v2, %v970_v22  ;;  %v935_v1 = vpop.permute.xlu1 %934  ;;  %v582_v20 = vmul.f32 %v1524_v30, %v558_v16  ;;  %v1028_v30 = vld [vmem:[%s1623_s7] sm:$0xf] }
 0x20b   : > { %v984_v29 = vadd.f32 0.2548296, %v981_v24 }
 0x20c   : > { %v983_v31 = vadd.f32 0.2548296, %v980_v26  ;;  %v1216_v21 = vadd.f32 -0.28449672, %v973_v27  ;;  %v1016_v27 = vmul.f32 0.5, %v1566_v39 }
 0x20d   : > { %v987_v32 = vmul.f32 %v1245_v54, %v984_v29 }
 0x20e   : > { %v979_v33 = vmul.f32 %v1249_v2, %v1216_v21  ;;  %v986_v38 = vmul.f32 %v1247_v56, %v983_v31  ;;  %v548_v56 = vsel %vm544_vm3, %v541_v50, %v543_v48  ;;  %v1027_v50 = vld [vmem:[%s1622_s6] sm:$0xf] }
 0x20f   : > { %v1002_v28 = vmul.f32 %v1251_v44, %v987_v32  ;;  %v560_v3 = vadd.f32 %v548_v56, %v500_v58 }
 0x210   : > { %v982_v42 = vadd.f32 0.2548296, %v979_v33  ;;  %v1001_v47 = vmul.f32 %v1253_v45, %v986_v38 }
 0x211   : > { %v1005_v51 = vsub.f32 1.0, %v1002_v28  ;;  %v584_v13 = vmul.f32 %v1551_v17, %v560_v3 }
 0x212   : > { %v985_v36 = vmul.f32 %v1249_v2, %v982_v42  ;;  %v1004_v55 = vsub.f32 1.0, %v1001_v47  ;;  %v1015_v42 = vmul.f32 0.5, %v1577_v46 }
 0x213   : > { %v1011_v2 = vsub.f32 0.0, %v1005_v51 }
 0x214   : > { %v1000_v54 = vmul.f32 %v1255_v49, %v985_v36  ;;  %v1010_v4 = vsub.f32 0.0, %v1004_v55 }
 0x215   : > { %v1014_v12 = vsel %vm1008_vm8, %v1011_v2, %v1005_v51 }
 0x216   : > { %v1003_v5 = vsub.f32 1.0, %v1000_v54  ;;  %v1013_v14 = vsel %vm1007_vm9, %v1010_v4, %v1004_v55  ;;  %v1020_v60 = vadd.f32 1.0, %v1014_v12 }
 0x217   : > { %v1019_v23 = vadd.f32 1.0, %v1013_v14 }
 0x218   : > { %v1009_v15 = vsub.f32 0.0, %v1003_v5  ;;  %v1023_v21 = vmul.f32 %v1020_v60, %v1017_v41 }
 0x219   : > { %v719_v62 = vpop.permute.xlu0 %718  ;;  %v1022_v33 = vmul.f32 %v1019_v23, %v1016_v27 }
 0x21a   : > { %v1012_v26 = vsel %vm1006_vm10, %v1009_v15, %v1003_v5 }
 0x21b   : > { %v1018_v35 = vadd.f32 1.0, %v1012_v26 }
 0x21d   : > { %v1021_v28 = vmul.f32 %v1018_v35, %v1015_v42 }
 0x21e   : > { %v721_v10 = vpop.permute.xlu0 %720  ;;  %v723_v11 = vpop.permute.xlu1 %722 }
 0x21f   : > { %v728_v8 = vsel %vm724_vm6, %v721_v10, %v723_v11  ;;  %v740_v19 = vadd.f32 %v723_v11, %v584_v13  ;;  %v727_v24 = vsel %vm724_vm6, %v719_v62, %v721_v10 }
 0x220   : > { %v739_v43 = vadd.f32 %v728_v8, %v583_v18  ;;  %v738_v37 = vadd.f32 %v727_v24, %v582_v20 }
 0x222   : > { %v907_v61 = vpop.permute.xlu0 %906  ;;  %v905_v22 = vpop.permute.xlu1 %904 }
 0x223   : > { %v924_v17 = vadd.f32 %v907_v61, %v740_v19  ;;  %v912_v25 = vsel %vm908_vm7, %v905_v22, %v907_v61 }
 0x224   : > { %v923_v29 = vadd.f32 %v912_v25, %v739_v43 }
 0x225   : > { %v942_v31 = vadd.f32 %v935_v1, %v924_v17 }
 0x226   : > { %v941_v32 = vadd.f32 %v935_v1, %v923_v29  ;;  %v903_v34 = vpop.permute.xlu1 %902 }
 0x227   : > { %v911_v38 = vsel %vm908_vm7, %v903_v34, %v905_v22  ;;  %v1026_v40 = vmul.f32 %v1023_v21, %v942_v31 }
 0x228   : > { %v922_v44 = vadd.f32 %v911_v38, %v738_v37  ;;  %v1025_v45 = vmul.f32 %v1022_v33, %v941_v32 }
 0x229   : > { %1041 = vrot.lane.b32.xlu1 %v1026_v40, %s1272_s29 }
 0x22a   : > { %v940_v39 = vadd.f32 %v935_v1, %v922_v44  ;;  %1039 = vrot.lane.b32.xlu0 %v1025_v45, %s1272_s29 }
 0x22c   : > { %v1024_v47 = vmul.f32 %v1021_v28, %v940_v39 }
 0x22d   : > { %1031 = vperm.xlu1 %1242, %v1028_v30  }
 0x22e   : > { %1037 = vrot.lane.b32.xlu0 %v1024_v47, %s1272_s29 }
 0x29b   : > { %v1042_v36 = vpop.permute.xlu1 %1041 }
 0x29c   : > { %v1040_v48 = vpop.permute.xlu0 %1039 }
 0x29d   : > { %v1045_v49 = vsel %vm1043_vm11, %v1040_v48, %v1042_v36 }
 0x29e   : > { %1052 = vmatprep.subr.mxu1 %v1045_v49 }
 0x2a0   : > { %v1038_v46 = vpop.permute.xlu0 %1037 }
 0x2a1   : > { %v1044_v51 = vsel %vm1043_vm11, %v1038_v46, %v1040_v48 }
 0x2a2   : > { %1053 = vmatpush1.msra.mxu1 %v1044_v51 }
 0x2a3   : > { %1219 = vmatmul.mubr.msk.f32.vlgmr.msra.gmra.mrb[0].mxu1 %vm1048_vm12, %v1027_v50 }
 0x2ac   : > { %v1032_v52 = vpop.permute.xlu1 %1031 }
 0x376   : > { %v1118_v53 = vpop.f32.mrb[0].mxu1 }
 0x377   : > { %v1119_v55 = vadd.f32 %v1118_v53, %v1032_v52  ;;  %v1120_v54 = vpop.f32.mrb[1].mxu1 }
 0x378   : > { %v1121_v57 = vadd.f32 %v1120_v54, %v1032_v52 }
 0x37a   : > { %v1125_v56 = vcombine.low %v1119_v55, %v1121_v57 }
 0x37c   : > { %1127 = vst [vmem:[%s305_s19] sm:$0xff] %v1125_v56 }
 0x37d PF: > { %s18_s27 = sadd.s32 1, %s1262_s27  }
 0x37e   : > { %p15_p4 = scmp.ge.s32.totalorder %s18_s27, 4  }
 0x380   :  { %17 = sbr.rel (!%p15_p4) target bundleno = 1 (0x1), region = 91 }

</bundles_post_ra>
